<compile_context>
chip_gen: v5e
topology: v5e:2x2
jax: 0.10.0
libtpu: 0.0.40
codegen_flags: <defaults>
</compile_context>

<pallas_src>
import functools

import jax
import jax.numpy as jnp
from jax.experimental import pallas as pl
from jax.experimental.pallas import tpu as pltpu

_DEFAULT_MAX_HW_TILE = 32768   # multiple of 128; ~2.75 MiB/buffer for C=21 f32
_VMEM_LIMIT_BYTES = 48 * 1024 * 1024


def _round_up(x, m):
    return ((x + m - 1) // m) * m


def _gini_kernel(x_ref, out_ref, *, hw, hw_tile):
    t = pl.program_id(1)

    x = x_ref[...].astype(jnp.float32)                  # (C, HW_TILE)

    # Numerically-stable softmax statistics over the channel axis (axis 0),
    # without materializing p:  sum_c p^2 = (sum_c e^2) / (sum_c e)^2.
    m = jnp.max(x, axis=0, keepdims=True)               # (1, HW_TILE)
    e = jnp.exp(x - m)                                  # (C, HW_TILE), <= 1
    s = jnp.sum(e, axis=0, keepdims=True)               # (1, HW_TILE)
    s2 = jnp.sum(e * e, axis=0, keepdims=True)          # (1, HW_TILE)
    # EUP approximate reciprocal (free slot under the exp stream); error ~2^-12,
    # averaged away over n*h*w pixels.
    ratio = s2 * pl.reciprocal(s * s, approx=True)      # per-pixel sum_c p^2

    def _full_tile_partial():
        # Every lane valid: sum_pixels (1 - ratio) = hw_tile - sum(ratio).
        return jnp.float32(hw_tile) - jnp.sum(ratio)

    if hw % hw_tile == 0:
        # All tiles are full: no masking anywhere.
        out_ref[...] = jnp.full(out_ref.shape, _full_tile_partial(), jnp.float32)
    else:
        last = pl.num_programs(1) - 1

        @pl.when(t != last)
        def _():
            out_ref[...] = jnp.full(out_ref.shape, _full_tile_partial(), jnp.float32)

        @pl.when(t == last)
        def _():
            # Ragged tail: mask out-of-range lanes (their block contents are garbage;
            # keep the select so Inf/NaN from garbage lanes never leaks into the sum).
            rem = hw % hw_tile                           # static, > 0 here
            lane = jax.lax.broadcasted_iota(jnp.int32, (1, hw_tile), 1)
            contrib = jnp.where(lane < rem, ratio, 0.0)
            partial = jnp.float32(rem) - jnp.sum(contrib)
            out_ref[...] = jnp.full(out_ref.shape, partial, jnp.float32)


@functools.partial(jax.jit, static_argnames=("max_hw_tile",))
def gini(predict, *, max_hw_tile=_DEFAULT_MAX_HW_TILE):
    """predict: (n, c, h, w) float array -> scalar gini impurity.

    bf16 logits in HBM are fine (and recommended on bandwidth-bound chips);
    the upcast to f32 happens in VMEM inside the kernel.
    """
    n, c, h, w = predict.shape
    hw = h * w
    # Free reshape (contiguous): channels on sublanes, pixels on lanes.
    x = predict.reshape(n, c, hw)

    hw_tile = min(max_hw_tile, _round_up(hw, 128))
    num_tiles = pl.cdiv(hw, hw_tile)

    kernel = functools.partial(_gini_kernel, hw=hw, hw_tile=hw_tile)

    in_bytes = n * c * hw * predict.dtype.itemsize
    out_bytes = n * num_tiles * 8 * 128 * 4

    partials = pl.pallas_call(
        kernel,
        # Independent per-(batch, tile) partial sums, lane-dense (8, 128) blocks.
        out_shape=jax.ShapeDtypeStruct((n, num_tiles, 8, 128), jnp.float32),
        grid_spec=pltpu.PrefetchScalarGridSpec(
            num_scalar_prefetch=0,
            grid=(n, num_tiles),
            in_specs=[
                # One (C, HW_TILE) tile per step; batch dim squeezed away.
                pl.BlockSpec((None, c, hw_tile), lambda b, t: (b, 0, t)),
            ],
            out_specs=pl.BlockSpec((None, None, 8, 128), lambda b, t: (b, t, 0, 0)),
        ),
        compiler_params=pltpu.CompilerParams(
            # No carried state -> both grid axes shardable across TensorCores (v7x).
            dimension_semantics=("parallel", "parallel"),
            vmem_limit_bytes=_VMEM_LIMIT_BYTES,
        ),
        cost_estimate=pl.CostEstimate(
            flops=6 * n * c * hw,
            transcendentals=n * c * hw,
            bytes_accessed=in_bytes + out_bytes,
        ),
    )(x)

    # Every slot of a (8, 128) block holds the same per-tile partial value.
    total = jnp.sum(partials[:, :, 0, 0])
    return total / jnp.float32(n * h * w)


def _gini_ref(predict):
    p = jax.nn.softmax(predict.astype(jnp.float32), axis=1)
    n, c, h, w = predict.shape
    gini_map = 1.0 - jnp.sum(p * p, axis=1)
    return jnp.sum(gini_map) / (n * h * w)


if __name__ == "__main__":
    key = jax.random.PRNGKey(0)
    k1, k2, k3 = jax.random.split(key, 3)

    # Tolerance note: the kernel uses the EUP approximate reciprocal (~2^-12
    # relative error per pixel), so compare at 1e-3 rather than 1e-5.
    TOL = 1e-3

    # Case 1: small shape consistent with the module; single full tile (fast path).
    n, c, h, w = 2, 4, 16, 16
    predict = jax.random.normal(k1, (n, c, h, w), dtype=jnp.float32)
    out = gini(predict)
    jax.block_until_ready(out)
    ref = _gini_ref(predict)
    assert jnp.allclose(out, ref, rtol=TOL, atol=TOL), (out, ref)

    # Case 2: ragged pixel count with a small tile -> exercises the masked last tile.
    n2, c2, h2, w2 = 2, 4, 16, 20   # hw = 320, tile = 128 -> last tile has 64 valid px
    predict2 = jax.random.normal(k2, (n2, c2, h2, w2), dtype=jnp.float32)
    out2 = gini(predict2, max_hw_tile=128)
    jax.block_until_ready(out2)
    ref2 = _gini_ref(predict2)
    assert jnp.allclose(out2, ref2, rtol=TOL, atol=TOL), (out2, ref2)

    # Case 3: bf16 logits in HBM (recommended on bandwidth-bound chips); in-kernel upcast.
    predict3 = jax.random.normal(k3, (n, c, h, w), dtype=jnp.float32).astype(jnp.bfloat16)
    out3 = gini(predict3)
    jax.block_until_ready(out3)
    ref3 = _gini_ref(predict3)
    assert jnp.allclose(out3, ref3, rtol=TOL, atol=TOL), (out3, ref3)

    print("KERNEL_OK")
</pallas_src>

<mosaic_0001>
module attributes {stable_mosaic.version = 11 : i64} {
  func.func @_gini_kernel(%arg0: i32, %arg1: i32, %arg2: memref<1x4x256xf32, #tpu.memory_space<vmem>>, %arg3: memref<1x1x8x128xf32, #tpu.memory_space<vmem>>) attributes {dimension_semantics = [#tpu.dimension_semantics<parallel>, #tpu.dimension_semantics<parallel>], iteration_bounds = array<i64: 2, 1>, scalar_prefetch = 0 : i64, scratch_operands = 0 : i64, tpu.core_type = #tpu.core_type<tc>, window_params = [{transform_indices = @transform_0, window_bounds = array<i64: 1, 4, 256>}, {transform_indices = @transform_1, window_bounds = array<i64: 1, 1, 8, 128>}]} {
    %c0 = arith.constant 0 : index
    %c0_0 = arith.constant 0 : index
    %c0_1 = arith.constant 0 : index
    %0 = vector.load %arg2[%c0, %c0_0, %c0_1] : memref<1x4x256xf32, #tpu.memory_space<vmem>>, vector<1x4x256xf32>
    %1 = vector.shape_cast %0 : vector<1x4x256xf32> to vector<4x256xf32>
    %cst = arith.constant dense<0xFF800000> : vector<256xf32>
    %2 = vector.multi_reduction <maximumf>, %1, %cst [0] : vector<4x256xf32> to vector<256xf32>
    %3 = vector.shape_cast %2 : vector<256xf32> to vector<1x256xf32>
    %4 = vector.broadcast %3 : vector<1x256xf32> to vector<4x256xf32>
    %5 = arith.subf %1, %4 : vector<4x256xf32>
    %6 = math.exp %5 : vector<4x256xf32>
    %cst_2 = arith.constant dense<0.000000e+00> : vector<256xf32>
    %7 = vector.multi_reduction <add>, %6, %cst_2 [0] : vector<4x256xf32> to vector<256xf32>
    %8 = vector.shape_cast %7 : vector<256xf32> to vector<1x256xf32>
    %9 = arith.mulf %6, %6 : vector<4x256xf32>
    %cst_3 = arith.constant dense<0.000000e+00> : vector<256xf32>
    %10 = vector.multi_reduction <add>, %9, %cst_3 [0] : vector<4x256xf32> to vector<256xf32>
    %11 = vector.shape_cast %10 : vector<256xf32> to vector<1x256xf32>
    %12 = arith.mulf %8, %8 : vector<1x256xf32>
    %13 = tpu.reciprocal %12 {approx = true} : vector<1x256xf32> -> vector<1x256xf32>
    %14 = arith.mulf %11, %13 : vector<1x256xf32>
    %15 = vector.shape_cast %14 : vector<1x256xf32> to vector<1x1x256xf32>
    %cst_4 = arith.constant dense<0.000000e+00> : vector<1xf32>
    %16 = vector.multi_reduction <add>, %15, %cst_4 [1, 2] : vector<1x1x256xf32> to vector<1xf32>
    %17 = vector.shape_cast %16 : vector<1xf32> to vector<1x1x1xf32>
    %18 = vector.extract %17[0, 0, 0] : f32 from vector<1x1x1xf32>
    %cst_5 = arith.constant 2.560000e+02 : f32
    %19 = arith.subf %cst_5, %18 : f32
    %20 = vector.broadcast %19 : f32 to vector<8x128xf32>
    %c0_6 = arith.constant 0 : index
    %c0_7 = arith.constant 0 : index
    %c0_8 = arith.constant 0 : index
    %c0_9 = arith.constant 0 : index
    %21 = vector.load %arg3[%c0_6, %c0_7, %c0_8, %c0_9] : memref<1x1x8x128xf32, #tpu.memory_space<vmem>>, vector<1x1x8x128xf32>
    %22 = vector.shape_cast %21 : vector<1x1x8x128xf32> to vector<8x128xf32>
    %23 = vector.shape_cast %20 : vector<8x128xf32> to vector<1x1x8x128xf32>
    tpu.vector_store %arg3[%c0_6, %c0_7, %c0_8, %c0_9], %23 {strides = array<i32>} : memref<1x1x8x128xf32, #tpu.memory_space<vmem>>, vector<1x1x8x128xf32>,
    return
  }
  func.func @transform_0(%arg0: i32, %arg1: i32) -> (i32, i32, i32) {
    %c0_i32 = arith.constant 0 : i32
    %c0_i32_0 = arith.constant 0 : i32
    return %arg0, %c0_i32, %arg1 : i32, i32, i32
  }
  func.func @transform_1(%arg0: i32, %arg1: i32) -> (i32, i32, i32, i32) {
    %c0_i32 = arith.constant 0 : i32
    %c0_i32_0 = arith.constant 0 : i32
    %c0_i32_1 = arith.constant 0 : i32
    return %arg0, %arg1, %c0_i32, %c0_i32_0 : i32, i32, i32, i32
  }
}

</mosaic_0001>

<bundles_post_ra>
// kernel: gini.1
= control target key start
LH: loop header
LB: loop body
LE: loop exit
PB: predicated region body
PF: predicated region fallthrough
CT: control target
= control target key end

     0   :  { %s398_s6 = smov 0   ;;  %s400_s7 = smov 0   ;;  %s445_s0 = inlined_call_operand.vmem [shape: f32[2,4,256], index: 0, kind: input, shape index: {}]   ;;  %s446_s1 = inlined_call_operand.vmem [shape: f32[2,1,8,128], index: 1, kind: output, shape index: {}]  }
   0x1   :  { %s402_s8 = smov 0  }
   0x2 LB: > { %s23_s9 = sadd.s32 1, %s382_s7  ;;  %p325_p0 = scmp.ge.s32.totalorder %s386_s8, 1  ;;  %s386_s8 = sphi %s402_s8, %s11_s8   ;;  %s382_s7 = sphi %s400_s7, %s448_s7   ;;  %s378_s6 = sphi %s398_s6, %s447_s6  }
   0x3   : > { %p25_p1 = scmp.ge.s32.totalorder %s23_s9, 2  ;;  %p108_p2 = scmp.lt.s32.totalorder %s386_s8, 3 }
   0x5   : > { %s450_s9 = smov (%p25_p1, %s23_s9), 0  ;;  %p109_p3 = pnand %p325_p0, %p108_p2 }
   0x6   : > { %p135_p4 = scmp.lt.s32.totalorder (!%p109_p3), %s378_s6, 1 }
   0x7   : > { %112 = sbr.rel (%p109_p3) target bundleno = 269 (0x10d), region = 24 }
   0xc   : > { %s452_s6 = smov (!%p135_p4, %s378_s6), 1  ;;  %vm158_vm0 = vcmask 1043456   ;;  %vm228_vm1 = vcmask 1040384  }
   0xd   : > { %s331_s10 = sshll.u32 %s452_s6, 3 }
   0xe   : > { %s142_s13 = scalar_lea.vmem %s445_s0, %s331_s10  ;;  %s150_s17 = scalar_lea.vmem %s446_s1, %s331_s10 }
   0xf   : > { %v151_v0 = vld [vmem:[%s142_s13] sm:$0xff] }
  0x10   : > { %153 = vst [vmem:[#allocation1] ss:$2 sm:$0xff] %v151_v0 }
  0x17   : > { %v154_v1 = vld.sshfl [vmem:[#allocation1] sm:$0xff pattern:$0x75316420]  ;;  %v155_v2 = vld.sshfl [vmem:[#allocation1 + $0x8] sm:$0xff pattern:$0x75316420] }
  0x18   : > { %v159_v3 = vsel %vm158_vm0, %v154_v1, -inf  ;;  %v166_v4 = vsel %vm158_vm0, %v155_v2, -inf }
  0x19   : > { %v160_v5 = vrot.slane %v159_v3, 4  ;;  %v167_v6 = vrot.slane %v166_v4, 4 }
  0x1b   : > { %v161_v7 = vmax.f32 %v159_v3, %v160_v5  ;;  %v168_v8 = vmax.f32 %v166_v4, %v167_v6 }
  0x1d   : > { %v162_v9 = vrot.slane %v161_v7, 2  ;;  %v169_v10 = vrot.slane %v168_v8, 2 }
  0x1f   : > { %v163_v11 = vmax.f32 %v161_v7, %v162_v9  ;;  %v170_v12 = vmax.f32 %v168_v8, %v169_v10 }
  0x21   : > { %v164_v13 = vrot.slane %v163_v11, 1  ;;  %v171_v14 = vrot.slane %v170_v12, 1 }
  0x23   : > { %v165_v15 = vmax.f32 %v163_v11, %v164_v13  ;;  %v172_v16 = vmax.f32 %v170_v12, %v171_v14 }
  0x25   : > { %v175_v17 = vrot.slane %v172_v16, 4 }
  0x27   : > { %v176_v18 = vsel %vm158_vm0, %v165_v15, %v175_v17 }
  0x28   : > { %v178_v19 = vsub.f32 %v151_v0, %v176_v18 }
  0x2a   : > { %v179_v20 = vmul.f32 1.442695, %v178_v19 }
  0x2c   : > { %358 = vpow2.f32 %v179_v20 }
  0x32   : > { %v359_v21 = vpop.eup %358 }
  0x33   : > { %182 = vst [vmem:[#allocation1] ss:$2 sm:$0xff] %v359_v21  ;;  %v201_v22 = vmul.f32 %v359_v21, %v359_v21 }
  0x3a   : > { %v183_v23 = vld.sshfl [vmem:[#allocation1] sm:$0xff pattern:$0x75316420]  ;;  %v184_v24 = vld.sshfl [vmem:[#allocation1 + $0x8] sm:$0xff pattern:$0x75316420] }
  0x3b   : > { %v187_v25 = vsel %vm158_vm0, %v183_v23, 0.0  ;;  %v194_v26 = vsel %vm158_vm0, %v184_v24, 0.0  ;;  %203 = vst [vmem:[#allocation1] ss:$2 sm:$0xff] %v201_v22 }
  0x3c   : > { %v188_v27 = vrot.slane %v187_v25, 4  ;;  %v195_v28 = vrot.slane %v194_v26, 4 }
  0x3e   : > { %v189_v29 = vadd.f32 %v188_v27, %v187_v25  ;;  %v196_v30 = vadd.f32 %v195_v28, %v194_v26 }
  0x40   : > { %v190_v31 = vrot.slane %v189_v29, 2  ;;  %v197_v32 = vrot.slane %v196_v30, 2 }
  0x42   : > { %v191_v33 = vadd.f32 %v190_v31, %v189_v29  ;;  %v198_v34 = vadd.f32 %v197_v32, %v196_v30  ;;  %v204_v35 = vld.sshfl [vmem:[#allocation1] sm:$0xff pattern:$0x75316420]  ;;  %v205_v36 = vld.sshfl [vmem:[#allocation1 + $0x8] sm:$0xff pattern:$0x75316420] }
  0x43   : > { %v208_v37 = vsel %vm158_vm0, %v204_v35, 0.0  ;;  %v215_v38 = vsel %vm158_vm0, %v205_v36, 0.0 }
  0x44   : > { %v192_v39 = vrot.slane %v191_v33, 1  ;;  %v199_v40 = vrot.slane %v198_v34, 1  ;;  %v209_v41 = vrot.slane %v208_v37, 4  ;;  %v216_v42 = vrot.slane %v215_v38, 4 }
  0x46   : > { %v193_v43 = vadd.f32 %v192_v39, %v191_v33  ;;  %v200_v44 = vadd.f32 %v199_v40, %v198_v34  ;;  %v210_v45 = vadd.f32 %v209_v41, %v208_v37  ;;  %v217_v46 = vadd.f32 %v216_v42, %v215_v38 }
  0x48   : > { %v211_v47 = vrot.slane %v210_v45, 2  ;;  %v218_v48 = vrot.slane %v217_v46, 2  ;;  %v222_v49 = vmul.f32 %v193_v43, %v193_v43  ;;  %v223_v50 = vmul.f32 %v200_v44, %v200_v44 }
  0x4a   : > { %v212_v51 = vadd.f32 %v211_v47, %v210_v45  ;;  %v219_v52 = vadd.f32 %v218_v48, %v217_v46  ;;  %360 = vrcp.f32 %v222_v49 }
  0x4b   : > { %362 = vrcp.f32 %v223_v50 }
  0x4c   : > { %v213_v53 = vrot.slane %v212_v51, 1  ;;  %v220_v54 = vrot.slane %v219_v52, 1 }
  0x4e   : > { %v214_v55 = vadd.f32 %v213_v53, %v212_v51  ;;  %v221_v56 = vadd.f32 %v220_v54, %v219_v52 }
  0x50   : > { %v361_v57 = vpop.eup %360 }
  0x51   : > { %v363_v58 = vpop.eup %362  ;;  %v226_v59 = vmul.f32 %v361_v57, %v214_v55 }
  0x52   : > { %v227_v60 = vmul.f32 %v363_v58, %v221_v56 }
  0x53   : > { %v229_v61 = vsel %vm228_vm1, %v226_v59, 0.0 }
  0x54   : > { %v230_v62 = vsel %vm228_vm1, %v227_v60, 0.0 }
  0x55   : > { %v231_v63 = vadd.f32 %v230_v62, %v229_v61 }
  0x57   : > { %232 = vadd.xlane.f32.xlu0 %v231_v63 }
  0xca   : > { %v233_v0 = vpop.xlane.xlu0 %232 }
  0xcb   : > { %v234_v1 = vrot.slane %v233_v0, 4 }
  0xcd   : > { %v235_v2 = vadd.f32 %v234_v1, %v233_v0 }
  0xcf   : > { %v236_v3 = vrot.slane %v235_v2, 2 }
  0xd1   : > { %v237_v4 = vadd.f32 %v236_v3, %v235_v2 }
  0xd3   : > { %v238_v5 = vrot.slane %v237_v4, 1 }
  0xd5   : > { %v239_v6 = vadd.f32 %v238_v5, %v237_v4 }
  0xd7   : > { %332 = vpush %v239_v6 }
 0x108   : > { %s333_s14 = spop %332 }
 0x109   : > { %s241_s18 = ssub.f32 256.0, %s333_s14 }
 0x10b   : > { %v242_v7 = vstv %s241_s18 }
 0x10c   : > { %243 = vst [vmem:[%s150_s17] sm:$0xff] %v242_v7 }
 0x10d PF: > { %s11_s8 = sadd.s32 1, %s386_s8   ;;  %s447_s6 = smov %s382_s7 }
 0x10e   : > { %p8_p5 = scmp.ge.s32.totalorder %s11_s8, 4   ;;  %s448_s7 = smov %s450_s9 }
 0x110   :  { %10 = sbr.rel (!%p8_p5) target bundleno = 2 (0x2), region = 54 }

</bundles_post_ra>
